<compile_context>
chip_gen: v5e
topology: v5e:2x2
jax: 0.10.0
libtpu: 0.0.40
codegen_flags: <defaults>
</compile_context>

<pallas_src>
import functools

import jax
import jax.numpy as jnp
from jax.experimental import pallas as pl
from jax.experimental.pallas import tpu as pltpu


def _round_up(x, m):
    return ((x + m - 1) // m) * m


def _mlp_kernel(x_ref, w1_ref, b1_ref, w2_ref, b2_ref, w3_ref, b3_ref,
                logits_ref, pred_ref):
    # Layer 1: x (TILE_N, S+P) bf16 @ W1 (S+P, H1) bf16, f32 accumulation.
    h1 = (jnp.dot(x_ref[...], w1_ref[...], preferred_element_type=jnp.float32)
          + b1_ref[...])
    h1 = jnp.maximum(h1, 0.0)                      # ReLU, f32 on VPU
    # TODO(synk): Dropout layers are identity here (eval-mode inference kernel).

    # Layer 2 (bf16 MXU operands, f32 accumulation; activation kept f32).
    h2 = (jnp.dot(h1.astype(jnp.bfloat16), w2_ref[...],
                  preferred_element_type=jnp.float32) + b2_ref[...])
    h2 = jax.nn.sigmoid(h2)                        # f32 on EUP

    # Layer 3 (logits, f32 output).
    logits = (jnp.dot(h2.astype(jnp.bfloat16), w3_ref[...],
                      preferred_element_type=jnp.float32) + b3_ref[...])
    logits_ref[...] = logits

    # argmax(log_softmax(x), dim=1) == argmax(x, dim=1) (log_softmax is monotone).
    # First-occurrence argmax via iota + where + min (matches torch.argmax).
    nlabels = logits.shape[1]
    idx = jax.lax.broadcasted_iota(jnp.int32, logits.shape, 1)
    maxv = jnp.max(logits, axis=1, keepdims=True)
    pred_ref[...] = jnp.min(jnp.where(logits == maxv, idx, nlabels),
                            axis=1, keepdims=True)


@functools.partial(jax.jit, static_argnames=("tile_n",))
def deepest_classifier_forward(representations, probes, params, tile_n=1024):
    """Runs the full forward pass with a batch-gridded Pallas kernel.

    Args:
        representations: (N, S) float32
        probes:          (N, P) float32
        params: dict with W1 (S+P, H1), b1 (H1,), W2 (H1, H2), b2 (H2,),
                W3 (H2, L), b3 (L,)
        tile_n: rows per grid step (rounded/clamped internally).

    Returns:
        (logits (N, L) float32, predicted (N,) int32)
    """
    N, S = representations.shape
    _, P = probes.shape
    W1, b1 = params["W1"], params["b1"]
    W2, b2 = params["W2"], params["b2"]
    W3, b3 = params["W3"], params["b3"]
    K = S + P
    H1 = W1.shape[1]
    H2 = W2.shape[1]
    L = W3.shape[1]

    # Fold the concat into the wrapper so the kernel issues one K=(S+P) MXU dot.
    x = jnp.concatenate([representations, probes], axis=1).astype(jnp.bfloat16)

    # bf16 weights (tiny, VMEM-resident across the grid), f32 biases.
    W1b = W1.astype(jnp.bfloat16)
    W2b = W2.astype(jnp.bfloat16)
    W3b = W3.astype(jnp.bfloat16)
    b1_2d = b1.reshape(1, H1).astype(jnp.float32)
    b2_2d = b2.reshape(1, H2).astype(jnp.float32)
    b3_2d = b3.reshape(1, L).astype(jnp.float32)

    # Batch tiling: multiple of 16 (bf16 sublane packing); pad N up to a tile multiple.
    tn = min(int(tile_n), _round_up(N, 16))
    tn = max(16, _round_up(tn, 16))
    N_pad = _round_up(N, tn)
    if N_pad != N:
        x = jnp.pad(x, ((0, N_pad - N), (0, 0)))
    grid = (N_pad // tn,)

    batched = lambda cols: pl.BlockSpec((tn, cols), lambda i: (i, 0))
    resident = lambda r, c: pl.BlockSpec((r, c), lambda i: (0, 0))

    logits, pred = pl.pallas_call(
        _mlp_kernel,
        out_shape=(
            jax.ShapeDtypeStruct((N_pad, L), jnp.float32),
            jax.ShapeDtypeStruct((N_pad, 1), jnp.int32),
        ),
        grid=grid,
        in_specs=[
            batched(K),          # x tile, streamed & double-buffered
            resident(K, H1),     # W1 (stays in VMEM across grid steps)
            resident(1, H1),     # b1
            resident(H1, H2),    # W2
            resident(1, H2),     # b2
            resident(H2, L),     # W3
            resident(1, L),      # b3
        ],
        out_specs=(batched(L), batched(1)),
        compiler_params=pltpu.CompilerParams(
            dimension_semantics=("parallel",)),
    )(x, W1b, b1_2d, W2b, b2_2d, W3b, b3_2d)

    return logits[:N], pred[:N, 0]


def init_params(key, input_dim, hidden_dim, hidden_dim_2, nlabels):
    """Deterministic PyTorch-Linear-style init: U(-1/sqrt(fan_in), 1/sqrt(fan_in))."""
    ks = jax.random.split(key, 6)

    def lin(kw, kb, fan_in, fan_out):
        bound = 1.0 / jnp.sqrt(jnp.float32(fan_in))
        W = jax.random.uniform(kw, (fan_in, fan_out), jnp.float32, -bound, bound)
        b = jax.random.uniform(kb, (fan_out,), jnp.float32, -bound, bound)
        return W, b

    W1, b1 = lin(ks[0], ks[1], input_dim, hidden_dim)
    W2, b2 = lin(ks[2], ks[3], hidden_dim, hidden_dim_2)
    W3, b3 = lin(ks[4], ks[5], hidden_dim_2, nlabels)
    return {"W1": W1, "b1": b1, "W2": W2, "b2": b2, "W3": W3, "b3": b3}


def reference_forward_f32(representations, probes, params):
    """Pure-f32 JAX reference (module semantics)."""
    x = jnp.concatenate([representations, probes], axis=1)
    h1 = jnp.maximum(x @ params["W1"] + params["b1"], 0.0)
    h2 = jax.nn.sigmoid(h1 @ params["W2"] + params["b2"])
    logits = h2 @ params["W3"] + params["b3"]
    pred = jnp.argmax(jax.nn.log_softmax(logits, axis=1), axis=1).astype(jnp.int32)
    return logits, pred


def reference_forward_bf16(representations, probes, params):
    """Reference mirroring the kernel's bf16-operand / f32-accumulation numerics."""
    bf = lambda a: a.astype(jnp.bfloat16)
    x = bf(jnp.concatenate([representations, probes], axis=1))
    h1 = jnp.maximum(
        jnp.dot(x, bf(params["W1"]), preferred_element_type=jnp.float32)
        + params["b1"], 0.0)
    h2 = jax.nn.sigmoid(
        jnp.dot(bf(h1), bf(params["W2"]), preferred_element_type=jnp.float32)
        + params["b2"])
    logits = (jnp.dot(bf(h2), bf(params["W3"]), preferred_element_type=jnp.float32)
              + params["b3"])
    pred = jnp.argmax(jax.nn.log_softmax(logits, axis=1), axis=1).astype(jnp.int32)
    return logits, pred


if __name__ == "__main__":
    # Small shapes consistent with the module's forward:
    #   N datapoints, dialogue_rep_dim S, probe_dim P, hidden_dim, hidden_dim_2, nlabels.
    N, S, P = 8, 16, 16
    hidden_dim, hidden_dim_2, nlabels = 32, 32, 8

    key = jax.random.PRNGKey(0)
    k_rep, k_probe, k_params = jax.random.split(key, 3)

    representations = jax.random.normal(k_rep, (N, S), jnp.float32)
    probes = jax.random.normal(k_probe, (N, P), jnp.float32)
    params = init_params(k_params, S + P, hidden_dim, hidden_dim_2, nlabels)

    logits, predicted = deepest_classifier_forward(representations, probes, params)
    logits = jax.block_until_ready(logits)
    predicted = jax.block_until_ready(predicted)

    ref_logits_f32, _ = reference_forward_f32(representations, probes, params)
    ref_logits_bf16, ref_pred_bf16 = reference_forward_bf16(
        representations, probes, params)

    assert logits.shape == (N, nlabels)
    assert predicted.shape == (N,)
    # Matches the bf16-operand reference tightly, and the pure-f32 module semantics
    # within bf16 input-rounding error.
    assert jnp.allclose(logits, ref_logits_bf16, atol=1e-4, rtol=1e-4)
    assert jnp.allclose(logits, ref_logits_f32, atol=3e-2, rtol=3e-2)
    assert jnp.array_equal(predicted, ref_pred_bf16)

    print("KERNEL_OK")
</pallas_src>

<mosaic_0001>
module attributes {stable_mosaic.version = 11 : i64} {
  func.func @_mlp_kernel(%arg0: i32, %arg1: memref<16x32xbf16, #tpu.memory_space<vmem>>, %arg2: memref<32x32xbf16, #tpu.memory_space<vmem>>, %arg3: memref<1x32xf32, #tpu.memory_space<vmem>>, %arg4: memref<32x32xbf16, #tpu.memory_space<vmem>>, %arg5: memref<1x32xf32, #tpu.memory_space<vmem>>, %arg6: memref<32x8xbf16, #tpu.memory_space<vmem>>, %arg7: memref<1x8xf32, #tpu.memory_space<vmem>>, %arg8: memref<16x8xf32, #tpu.memory_space<vmem>>, %arg9: memref<16x1xi32, #tpu.memory_space<vmem>>) attributes {dimension_semantics = [#tpu.dimension_semantics<parallel>], iteration_bounds = array<i64: 1>, scalar_prefetch = 0 : i64, scratch_operands = 0 : i64, tpu.core_type = #tpu.core_type<tc>, window_params = [{transform_indices = @transform_0, window_bounds = array<i64: 16, 32>}, {pipeline_mode = #tpu.pipeline_mode<synchronous>, transform_indices = @transform_1, window_bounds = array<i64: 32, 32>}, {pipeline_mode = #tpu.pipeline_mode<synchronous>, transform_indices = @transform_2, window_bounds = array<i64: 1, 32>}, {pipeline_mode = #tpu.pipeline_mode<synchronous>, transform_indices = @transform_3, window_bounds = array<i64: 32, 32>}, {pipeline_mode = #tpu.pipeline_mode<synchronous>, transform_indices = @transform_4, window_bounds = array<i64: 1, 32>}, {pipeline_mode = #tpu.pipeline_mode<synchronous>, transform_indices = @transform_5, window_bounds = array<i64: 32, 8>}, {pipeline_mode = #tpu.pipeline_mode<synchronous>, transform_indices = @transform_6, window_bounds = array<i64: 1, 8>}, {transform_indices = @transform_7, window_bounds = array<i64: 16, 8>}, {transform_indices = @transform_8, window_bounds = array<i64: 16, 1>}]} {
    %c0 = arith.constant 0 : index
    %c0_0 = arith.constant 0 : index
    %0 = vector.load %arg1[%c0, %c0_0] : memref<16x32xbf16, #tpu.memory_space<vmem>>, vector<16x32xbf16>
    %c0_1 = arith.constant 0 : index
    %c0_2 = arith.constant 0 : index
    %1 = vector.load %arg2[%c0_1, %c0_2] : memref<32x32xbf16, #tpu.memory_space<vmem>>, vector<32x32xbf16>
    %cst = arith.constant dense<0.000000e+00> : vector<16x32xf32>
    %2 = tpu.matmul %0, %1, %cst {dimension_numbers = #tpu.dot_dimension_numbers<[1], [0], [0], [1], [0, 0, 1, 1], [], []>} : vector<16x32xbf16>, vector<32x32xbf16>, vector<16x32xf32> -> vector<16x32xf32>
    %c0_3 = arith.constant 0 : index
    %c0_4 = arith.constant 0 : index
    %3 = vector.load %arg3[%c0_3, %c0_4] : memref<1x32xf32, #tpu.memory_space<vmem>>, vector<1x32xf32>
    %4 = vector.broadcast %3 : vector<1x32xf32> to vector<16x32xf32>
    %5 = arith.addf %2, %4 : vector<16x32xf32>
    %cst_5 = arith.constant 0.000000e+00 : f32
    %6 = vector.broadcast %cst_5 : f32 to vector<16x32xf32>
    %7 = arith.maximumf %5, %6 : vector<16x32xf32>
    %8 = arith.truncf %7 : vector<16x32xf32> to vector<16x32xbf16>
    %c0_6 = arith.constant 0 : index
    %c0_7 = arith.constant 0 : index
    %9 = vector.load %arg4[%c0_6, %c0_7] : memref<32x32xbf16, #tpu.memory_space<vmem>>, vector<32x32xbf16>
    %cst_8 = arith.constant dense<0.000000e+00> : vector<16x32xf32>
    %10 = tpu.matmul %8, %9, %cst_8 {dimension_numbers = #tpu.dot_dimension_numbers<[1], [0], [0], [1], [0, 0, 1, 1], [], []>} : vector<16x32xbf16>, vector<32x32xbf16>, vector<16x32xf32> -> vector<16x32xf32>
    %c0_9 = arith.constant 0 : index
    %c0_10 = arith.constant 0 : index
    %11 = vector.load %arg5[%c0_9, %c0_10] : memref<1x32xf32, #tpu.memory_space<vmem>>, vector<1x32xf32>
    %12 = vector.broadcast %11 : vector<1x32xf32> to vector<16x32xf32>
    %13 = arith.addf %10, %12 : vector<16x32xf32>
    %14 = arith.negf %13 : vector<16x32xf32>
    %15 = math.exp %14 : vector<16x32xf32>
    %cst_11 = arith.constant 1.000000e+00 : f32
    %16 = vector.broadcast %cst_11 : f32 to vector<16x32xf32>
    %17 = arith.addf %16, %15 : vector<16x32xf32>
    %18 = arith.divf %16, %17 : vector<16x32xf32>
    %19 = arith.truncf %18 : vector<16x32xf32> to vector<16x32xbf16>
    %c0_12 = arith.constant 0 : index
    %c0_13 = arith.constant 0 : index
    %20 = vector.load %arg6[%c0_12, %c0_13] : memref<32x8xbf16, #tpu.memory_space<vmem>>, vector<32x8xbf16>
    %cst_14 = arith.constant dense<0.000000e+00> : vector<16x8xf32>
    %21 = tpu.matmul %19, %20, %cst_14 {dimension_numbers = #tpu.dot_dimension_numbers<[1], [0], [0], [1], [0, 0, 1, 1], [], []>} : vector<16x32xbf16>, vector<32x8xbf16>, vector<16x8xf32> -> vector<16x8xf32>
    %c0_15 = arith.constant 0 : index
    %c0_16 = arith.constant 0 : index
    %22 = vector.load %arg7[%c0_15, %c0_16] : memref<1x8xf32, #tpu.memory_space<vmem>>, vector<1x8xf32>
    %23 = vector.broadcast %22 : vector<1x8xf32> to vector<16x8xf32>
    %24 = arith.addf %21, %23 : vector<16x8xf32>
    %c0_17 = arith.constant 0 : index
    %c0_18 = arith.constant 0 : index
    %25 = vector.load %arg8[%c0_17, %c0_18] : memref<16x8xf32, #tpu.memory_space<vmem>>, vector<16x8xf32>
    tpu.vector_store %arg8[%c0_17, %c0_18], %24 {strides = array<i32>} : memref<16x8xf32, #tpu.memory_space<vmem>>, vector<16x8xf32>,
    %26 = tpu.iota {dimensions = array<i32: 1>} : vector<16x8xi32>
    %cst_19 = arith.constant dense<0xFF800000> : vector<16xf32>
    %27 = vector.multi_reduction <maximumf>, %24, %cst_19 [1] : vector<16x8xf32> to vector<16xf32>
    %28 = vector.shape_cast %27 : vector<16xf32> to vector<16x1xf32>
    %29 = vector.broadcast %28 : vector<16x1xf32> to vector<16x8xf32>
    %30 = arith.cmpf oeq, %24, %29 : vector<16x8xf32>
    %c8_i32 = arith.constant 8 : i32
    %31 = vector.broadcast %c8_i32 : i32 to vector<16x8xi32>
    %32 = arith.select %30, %26, %31 : vector<16x8xi1>, vector<16x8xi32>
    %cst_20 = arith.constant dense<2147483647> : vector<16xi32>
    %33 = vector.multi_reduction <minsi>, %32, %cst_20 [1] : vector<16x8xi32> to vector<16xi32>
    %34 = vector.shape_cast %33 : vector<16xi32> to vector<16x1xi32>
    %c0_21 = arith.constant 0 : index
    %c0_22 = arith.constant 0 : index
    %35 = vector.load %arg9[%c0_21, %c0_22] : memref<16x1xi32, #tpu.memory_space<vmem>>, vector<16x1xi32>
    tpu.vector_store %arg9[%c0_21, %c0_22], %34 {strides = array<i32>} : memref<16x1xi32, #tpu.memory_space<vmem>>, vector<16x1xi32>,
    return
  }
  func.func @transform_0(%arg0: i32) -> (i32, i32) {
    %c0_i32 = arith.constant 0 : i32
    %c0_i32_0 = arith.constant 0 : i32
    return %arg0, %c0_i32 : i32, i32
  }
  func.func @transform_1(%arg0: i32) -> (i32, i32) {
    %c0_i32 = arith.constant 0 : i32
    %c0_i32_0 = arith.constant 0 : i32
    %c0_i32_1 = arith.constant 0 : i32
    return %c0_i32, %c0_i32_0 : i32, i32
  }
  func.func @transform_2(%arg0: i32) -> (i32, i32) {
    %c0_i32 = arith.constant 0 : i32
    %c0_i32_0 = arith.constant 0 : i32
    %c0_i32_1 = arith.constant 0 : i32
    return %c0_i32, %c0_i32_0 : i32, i32
  }
  func.func @transform_3(%arg0: i32) -> (i32, i32) {
    %c0_i32 = arith.constant 0 : i32
    %c0_i32_0 = arith.constant 0 : i32
    %c0_i32_1 = arith.constant 0 : i32
    return %c0_i32, %c0_i32_0 : i32, i32
  }
  func.func @transform_4(%arg0: i32) -> (i32, i32) {
    %c0_i32 = arith.constant 0 : i32
    %c0_i32_0 = arith.constant 0 : i32
    %c0_i32_1 = arith.constant 0 : i32
    return %c0_i32, %c0_i32_0 : i32, i32
  }
  func.func @transform_5(%arg0: i32) -> (i32, i32) {
    %c0_i32 = arith.constant 0 : i32
    %c0_i32_0 = arith.constant 0 : i32
    %c0_i32_1 = arith.constant 0 : i32
    return %c0_i32, %c0_i32_0 : i32, i32
  }
  func.func @transform_6(%arg0: i32) -> (i32, i32) {
    %c0_i32 = arith.constant 0 : i32
    %c0_i32_0 = arith.constant 0 : i32
    %c0_i32_1 = arith.constant 0 : i32
    return %c0_i32, %c0_i32_0 : i32, i32
  }
  func.func @transform_7(%arg0: i32) -> (i32, i32) {
    %c0_i32 = arith.constant 0 : i32
    %c0_i32_0 = arith.constant 0 : i32
    return %arg0, %c0_i32 : i32, i32
  }
  func.func @transform_8(%arg0: i32) -> (i32, i32) {
    %c0_i32 = arith.constant 0 : i32
    %c0_i32_0 = arith.constant 0 : i32
    return %arg0, %c0_i32 : i32, i32
  }
}

</mosaic_0001>

<bundles_post_ra>
// kernel: deepest_classifier_forward.1
= control target key start
LH: loop header
LB: loop body
LE: loop exit
PB: predicated region body
PF: predicated region fallthrough
CT: control target
= control target key end

     0   :  { %vm56_vm0 = vcmask 261120   ;;  %vm190_vm9 = vcmask 64512   ;;  %v193_v54 = vlaneseq  ;;  %vm235_vm14 = vcmask 7168   ;;  %s393_s1 = inlined_call_operand.vmem [shape: bf16[32,32], index: 1, kind: input, shape index: {}]   ;;  %s394_s2 = inlined_call_operand.vmem [shape: f32[1,32], index: 2, kind: input, shape index: {}]   ;;  %s395_s0 = inlined_call_operand.vmem [shape: bf16[16,32], index: 0, kind: input, shape index: {}]   ;;  %s396_s4 = inlined_call_operand.vmem [shape: f32[1,32], index: 4, kind: input, shape index: {}]   ;;  %s397_s3 = inlined_call_operand.vmem [shape: bf16[32,32], index: 3, kind: input, shape index: {}]   ;;  %s398_s6 = inlined_call_operand.vmem [shape: f32[1,8], index: 6, kind: input, shape index: {}]   ;;  %s399_s5 = inlined_call_operand.vmem [shape: bf16[32,8], index: 5, kind: input, shape index: {}]   ;;  %s400_s7 = inlined_call_operand.vmem [shape: f32[16,8], index: 7, kind: output, shape index: {0}]   ;;  %s401_s8 = inlined_call_operand.vmem [shape: s32[16,1], index: 8, kind: output, shape index: {1}]  }
   0x1   :  { %v281_v0 = vld [vmem:[%s393_s1 + $0x8] sm:$0xff]  ;;  %v280_v1 = vld [vmem:[%s393_s1] sm:$0xff] }
   0x2   :  { %66 = vmatpush.bf16.msra.mxu0 %v281_v0  ;;  %v279_v2 = vld [vmem:[%s395_s0] sm:$0xff]  ;;  %v283_v3 = vld [vmem:[%s397_s3 + $0x8] sm:$0xff]  ;;  %v194_v55 = vand.u32 127, %v193_v54 }
   0x3   :  { %106 = vmatpush.bf16.msra.mxu1 %v283_v3  ;;  %v282_v4 = vld [vmem:[%s397_s3] sm:$0xff]  ;;  %v285_v14 = vld [vmem:[%s399_s5 + $0x8] sm:$0xff] }
   0x4   :  { %v286_v6 = vld [vmem:[%s394_s2] ss:$0 sm:$0xff]  ;;  %182 = vmatpush.bf16.msra.mxu2 %v285_v14 }
   0x5   :  { %v287_v13 = vld [vmem:[%s396_s4] ss:$0 sm:$0xff] }
   0x6   :  { %67 = vmatpush.bf16.msra.mxu0 %v280_v1  ;;  %v284_v15 = vld [vmem:[%s399_s5] sm:$0xff] }
   0x7   :  { %107 = vmatpush.bf16.msra.mxu1 %v282_v4  ;;  %v288_v47 = vld [vmem:[%s398_s6] ss:$0 sm:$0xff] }
   0x8   :  { %183 = vmatpush.bf16.msra.mxu2 %v284_v15 }
   0x9   :  { %258 = vmatmul.msk.bf16.vlgmr.msra.gmra.mxu0 %vm56_vm0, %v279_v2 }
  0x86   :  { %v69_v5 = vpop.f32.mrf.mxu0 }
  0x87   :  { %v70_v7 = vadd.f32 %v286_v6, %v69_v5 }
  0x89   :  { %v74_v10 = vmax.f32 %v70_v7, 0.0 }
  0x8e   :  { %v71_v8 = vpop.f32.mrf.mxu0 }
  0x8f   :  { %v72_v9 = vadd.f32 %v286_v6, %v71_v8 }
  0x91   :  { %v75_v11 = vmax.f32 %v72_v9, 0.0 }
  0x93   :  { %v76_v12 = vpack.c.bf16 %v75_v11, %v74_v10 }
  0x95   :  { %267 = vmatmul.msk.bf16.vlgmr.msra.gmra.mxu1 %vm56_vm0, %v76_v12 }
 0x112   :  { %v109_v16 = vpop.f32.mrf.mxu1 }
 0x113   :  { %v110_v17 = vadd.f32 %v287_v13, %v109_v16 }
 0x115   :  { %v268_v18 = vmul.f32 -1.442695, %v110_v17 }
 0x117   :  { %289 = vpow2.f32 %v268_v18 }
 0x11a   :  { %v111_v19 = vpop.f32.mrf.mxu1 }
 0x11b   :  { %v112_v20 = vadd.f32 %v287_v13, %v111_v19 }
 0x11d   :  { %v290_v21 = vpop.eup %289  ;;  %v269_v22 = vmul.f32 -1.442695, %v112_v20 }
 0x11e   :  { %v120_v23 = vadd.f32 1.0, %v290_v21 }
 0x11f   :  { %291 = vpow2.f32 %v269_v22 }
 0x120   :  { %293 = vrcp.f32 %v120_v23  ;;  %vm127_vm2 = vweird.f32 %v120_v23  ;;  %v133_v34 = vand.u32 2147483648, %v120_v23  ;;  %v131_v36 = vand.u32 2147483647, %v120_v23 }
 0x122   :  { %v134_v41 = vor.u32 1.1754944e-38, %v133_v34  ;;  %vm132_vm7 = vcmp.eq.f32.partialorder %v131_v36, 8.507059e+37 }
 0x125   :  { %v292_v24 = vpop.eup %291 }
 0x126   :  { %v294_v25 = vpop.eup %293  ;;  %v121_v26 = vadd.f32 1.0, %v292_v24 }
 0x127   :  { %v123_v27 = vmul.f32 %v294_v25, %v120_v23  ;;  %vm128_vm1 = vweird.f32 %v294_v25 }
 0x128   :  { %295 = vrcp.f32 %v121_v26  ;;  %v148_v35 = vand.u32 2147483648, %v121_v26  ;;  %v146_v38 = vand.u32 2147483647, %v121_v26  ;;  %vm129_vm4 = vmor %vm127_vm2, %vm128_vm1  ;;  %vm142_vm5 = vweird.f32 %v121_v26 }
 0x129   :  { %v124_v28 = vsub.f32 1.0, %v123_v27 }
 0x12a   :  { %v149_v42 = vor.u32 1.1754944e-38, %v148_v35  ;;  %vm147_vm8 = vcmp.eq.f32.partialorder %v146_v38, 8.507059e+37 }
 0x12b   :  { %v125_v29 = vmul.f32 %v294_v25, %v124_v28 }
 0x12d   :  { %v126_v32 = vadd.f32 %v294_v25, %v125_v29 }
 0x12e   :  { %v296_v30 = vpop.eup %295 }
 0x12f   :  { %v138_v31 = vmul.f32 %v296_v30, %v121_v26  ;;  %vm143_vm3 = vweird.f32 %v296_v30  ;;  %v130_v39 = vsel %vm129_vm4, %v294_v25, %v126_v32 }
 0x130   :  { %vm144_vm6 = vmor %vm142_vm5, %vm143_vm3  ;;  %v135_v44 = vsel %vm132_vm7, %v134_v41, %v130_v39 }
 0x131   :  { %v139_v33 = vsub.f32 1.0, %v138_v31 }
 0x133   :  { %v140_v37 = vmul.f32 %v296_v30, %v139_v33 }
 0x135   :  { %v141_v40 = vadd.f32 %v296_v30, %v140_v37 }
 0x137   :  { %v145_v43 = vsel %vm144_vm6, %v296_v30, %v141_v40 }
 0x138   :  { %v150_v45 = vsel %vm147_vm8, %v149_v42, %v145_v43 }
 0x139   :  { %v152_v46 = vpack.c.bf16 %v150_v45, %v135_v44 }
 0x13b   :  { %278 = vmatmul.msk.bf16.vlgmr.msra.gmra.mxu2 %vm56_vm0, %v152_v46 }
 0x1be   :  { %v185_v48 = vpop.f32.mrf.mxu2 }
 0x1bf   :  { %v186_v49 = vadd.f32 %v288_v47, %v185_v48 }
 0x1c1   :  { %191 = vst.msk [vmem:[%s400_s7] sm:$0xff] %vm190_vm9, %v186_v49  ;;  %v195_v50 = vsel %vm190_vm9, %v186_v49, -inf }
 0x1c2   :  { %196 = vmax.xlane.f32.xlu0 %v195_v50 }
 0x1c6   :  { %v187_v51 = vpop.f32.mrf.mxu2 }
 0x1c7   :  { %v188_v52 = vadd.f32 %v288_v47, %v187_v51 }
 0x1c9   :  { %192 = vst.msk [vmem:[%s400_s7 + $0x8] sm:$0xff] %vm190_vm9, %v188_v52  ;;  %v198_v53 = vsel %vm190_vm9, %v188_v52, -inf }
 0x1ca   :  { %199 = vmax.xlane.f32.xlu0 %v198_v53 }
 0x235   :  { %v197_v56 = vpop.xlane.xlu0 %196 }
 0x236   :  { %vm201_vm10 = vcmp.eq.f32.partialorder %v186_v49, %v197_v56 }
 0x237   :  { %v203_v57 = vsel %vm201_vm10, %v194_v55, 8 }
 0x238   :  { %v205_v58 = vsel %vm190_vm9, %v203_v57, 2147483647 }
 0x239   :  { %v207_v59 = vshra.s32 %v205_v58, 16  ;;  %v206_v2 = vand.u32 65535, %v205_v58 }
 0x23b   :  { %v209_v60 = vcvt.s32.f32 %v207_v59  ;;  %v208_v4 = vcvt.s32.f32 %v206_v2 }
 0x23d   :  { %210 = vmin.xlane.f32.xlu1 %v209_v60  ;;  %v200_v61 = vpop.xlane.xlu0 %199 }
 0x23e   :  { %vm202_vm11 = vcmp.eq.f32.partialorder %v188_v52, %v200_v61 }
 0x23f   :  { %v204_v62 = vsel %vm202_vm11, %v194_v55, 8 }
 0x240   :  { %v220_v63 = vsel %vm190_vm9, %v204_v62, 2147483647 }
 0x241   :  { %v222_v0 = vshra.s32 %v220_v63, 16  ;;  %v221_v6 = vand.u32 65535, %v220_v63 }
 0x243   :  { %v224_v1 = vcvt.s32.f32 %v222_v0  ;;  %v223_v8 = vcvt.s32.f32 %v221_v6 }
 0x245   :  { %225 = vmin.xlane.f32.xlu1 %v224_v1 }
 0x2b0   :  { %v211_v3 = vpop.xlane.xlu1 %210 }
 0x2b1   :  { %vm212_vm12 = vcmp.eq.f32.partialorder %v209_v60, %v211_v3  ;;  %v217_v10 = vcvt.f32.s32 %v211_v3 }
 0x2b2   :  { %v213_v5 = vsel %vm212_vm12, %v208_v4, inf }
 0x2b3   :  { %214 = vmin.xlane.f32.xlu2 %v213_v5  ;;  %v218_v12 = vshll.u32 %v217_v10, 16 }
 0x2b8   :  { %v226_v7 = vpop.xlane.xlu1 %225 }
 0x2b9   :  { %vm227_vm13 = vcmp.eq.f32.partialorder %v224_v1, %v226_v7  ;;  %v232_v15 = vcvt.f32.s32 %v226_v7 }
 0x2ba   :  { %v228_v9 = vsel %vm227_vm13, %v223_v8, inf }
 0x2bb   :  { %229 = vmin.xlane.f32.xlu2 %v228_v9  ;;  %v233_v17 = vshll.u32 %v232_v15, 16 }
 0x326   :  { %v215_v11 = vpop.xlane.xlu2 %214 }
 0x327   :  { %v216_v13 = vcvt.f32.s32 %v215_v11 }
 0x329   :  { %v219_v14 = vadd.s32 %v218_v12, %v216_v13 }
 0x32b   :  { %236 = vst.msk [vmem:[%s401_s8] sm:$0xff] %vm235_vm14, %v219_v14 }
 0x32e   :  { %v230_v16 = vpop.xlane.xlu2 %229 }
 0x32f   :  { %v231_v18 = vcvt.f32.s32 %v230_v16 }
 0x331   :  { %v234_v19 = vadd.s32 %v233_v17, %v231_v18 }
 0x333   :  { %237 = vst.msk [vmem:[%s401_s8 + $0x8] sm:$0xff] %vm235_vm14, %v234_v19 }

</bundles_post_ra>
